<compile_context>
chip_gen: v6e
topology: v6e:2x2x1
jax: 0.10.0
libtpu: 0.0.40
codegen_flags: <defaults>
</compile_context>

<pallas_src>
import math
import functools

import jax
import jax.numpy as jnp
import numpy as np
from jax.experimental import pallas as pl
from jax.experimental.pallas import tpu as pltpu


def _round_up(x, m):
    return ((x + m - 1) // m) * m


def _cdiv(a, b):
    return -(-a // b)


def _choose_block_m(m, tm):
    """Batch tile: >= 2 roughly equal, 8-row-aligned blocks so v7x's two
    TensorCores both get work and the ragged tail stays balanced."""
    if m <= 16:
        return m                                 # single tiny block (full extent)
    n_blocks = max(2, _cdiv(m, tm))              # at least 2 blocks (v7x megacore)
    return min(_round_up(_cdiv(m, n_blocks), 8), _round_up(m, 8))


# ----------------------------------------------------------------------------
# Fused MLP kernel: sigmoid( leaky_relu( x @ W1 + b1 ) @ W2 + b2 )
# ----------------------------------------------------------------------------
def _disnet_kernel(x_ref, w1_ref, b1_ref, w2_ref, b2_ref, o_ref, *,
                   negative_slope):
    mm_dtype = w1_ref.dtype                      # bf16 on the fast path
    x = x_ref[...].astype(mm_dtype)

    # Linear 1 on the MXU with f32 accumulation; bias + LeakyReLU in f32 (VPU).
    h = jnp.dot(x, w1_ref[...], preferred_element_type=jnp.float32) + b1_ref[...]
    h = jnp.where(h > 0, h, negative_slope * h)

    # Linear 2 + bias + exact sigmoid (exp issues on the otherwise-idle EUP).
    y = jnp.dot(h.astype(mm_dtype), w2_ref[...],
                preferred_element_type=jnp.float32) + b2_ref[...]
    o_ref[...] = (1.0 / (1.0 + jnp.exp(-y))).astype(o_ref.dtype)


def disnet_forward(x, w1_p, b1_p, w2_p, b2_p, *, negative_slope=0.2, tm=512):
    """x: (M, in_dim) f32.
    w1_p: (in_dim, hid_pad), w2_p: (hid_pad, out_dim)  -- pre-transposed, only
    the hidden (lane) dim padded to a multiple of 128, stored in the matmul
    dtype (bf16 by default).  b1_p: (1, hid_pad), b2_p: (1, out_dim) f32.
    Returns (M, out_dim) f32 -- no wrapper pad/slice round-trips."""
    m, in_dim = x.shape
    in_dim_w, hid_pad = w1_p.shape
    hid_pad2, out_dim = w2_p.shape
    assert in_dim == in_dim_w and hid_pad == hid_pad2

    block_m = _choose_block_m(m, tm)
    grid = (_cdiv(m, block_m),)

    w_bytes = jnp.dtype(w1_p.dtype).itemsize
    flops = 2 * m * (in_dim * hid_pad + hid_pad * out_dim)
    bytes_accessed = (4 * m * in_dim
                      + w_bytes * (in_dim * hid_pad + hid_pad * out_dim)
                      + 4 * (hid_pad + out_dim)
                      + 4 * m * out_dim)

    # Explicit VMEM budget from the actual footprint: 2x-buffered x/out tiles,
    # resident weights/biases (counted 2x to be conservative), f32 hidden tile.
    # Clamped to [32 MiB, 56 MiB] so it is valid on v5e/v6e/v7x alike.
    vmem_need = (2 * block_m * in_dim * 4
                 + 2 * block_m * out_dim * 4
                 + 2 * w_bytes * (in_dim * hid_pad + hid_pad * out_dim)
                 + 2 * 4 * (hid_pad + out_dim)
                 + block_m * hid_pad * 4)
    vmem_limit = int(min(max(1.5 * vmem_need + (4 << 20), 32 << 20), 56 << 20))

    # TODO(synk): when the weights stop fitting VMEM-resident (large
    # in_dim/out_dim), add K/N tiling with a VMEM accumulator + pl.when
    # init/finalize, and single-buffer the weight specs
    # (pipeline_mode=pl.Buffered(1) or stage once into scratch) for v7x's
    # 64 MiB VMEM.
    return pl.pallas_call(
        functools.partial(_disnet_kernel, negative_slope=negative_slope),
        out_shape=jax.ShapeDtypeStruct((m, out_dim), jnp.float32),
        grid=grid,
        in_specs=[
            # x tile: K left at in_dim (full extent); Mosaic pads it in VMEM,
            # so no separate XLA pad op touches HBM.
            pl.BlockSpec((block_m, in_dim), lambda i: (i, 0)),
            pl.BlockSpec((in_dim, hid_pad), lambda i: (0, 0)),    # W1 (resident)
            pl.BlockSpec((1, hid_pad), lambda i: (0, 0)),         # b1
            pl.BlockSpec((hid_pad, out_dim), lambda i: (0, 0)),   # W2 (resident)
            pl.BlockSpec((1, out_dim), lambda i: (0, 0)),         # b2
        ],
        # Output N is the true out_dim (full-extent block): no padded columns,
        # no post-kernel slice.
        out_specs=pl.BlockSpec((block_m, out_dim), lambda i: (i, 0)),
        compiler_params=pltpu.CompilerParams(
            dimension_semantics=("parallel",),
            vmem_limit_bytes=vmem_limit),
        cost_estimate=pl.CostEstimate(
            flops=flops,
            transcendentals=m * out_dim,
            bytes_accessed=bytes_accessed),
    )(x, w1_p, b1_p, w2_p, b2_p)


# ----------------------------------------------------------------------------
# DisNet module (mirrors the PyTorch nn.Sequential).
# ----------------------------------------------------------------------------
class DisNet:
    def __init__(self, key, in_dim, out_dim, *, negative_slope=0.2,
                 matmul_dtype=jnp.bfloat16):
        self.in_dim = in_dim
        self.out_dim = out_dim
        self.negative_slope = negative_slope
        self.matmul_dtype = matmul_dtype

        k1, k2, k3, k4 = jax.random.split(key, 4)
        s1 = 1.0 / math.sqrt(in_dim)
        w1 = jax.random.uniform(k1, (out_dim, in_dim), minval=-s1, maxval=s1,
                                dtype=jnp.float32)
        b1 = jax.random.uniform(k2, (out_dim,), minval=-s1, maxval=s1,
                                dtype=jnp.float32)
        s2 = 1.0 / math.sqrt(out_dim)
        w2 = jax.random.uniform(k3, (out_dim, out_dim), minval=-s2, maxval=s2,
                                dtype=jnp.float32)
        b2 = jax.random.uniform(k4, (out_dim,), minval=-s2, maxval=s2,
                                dtype=jnp.float32)
        # keep unpadded f32 params for the reference computation
        self.w1, self.b1, self.w2, self.b2 = w1, b1, w2, b2

        # Pre-transpose to (K, N) once at init.  Only the *hidden* dim (the
        # lane dim of W1/h and the K dim of W2) is zero-padded to 128; the
        # input K and the output N keep their true sizes so the wrapper needs
        # neither a pad of x nor a slice of the output.
        # TODO(synk): on v6e/v7x, sweep padding the hidden dim to a multiple
        # of 256 when it lands on an odd multiple of 128 (2x256x256 MXU fill).
        hid = out_dim                      # hidden width == out_dim in DisNet
        hid_pad = _round_up(hid, 128)
        self.w1_p = (jnp.zeros((in_dim, hid_pad), jnp.float32)
                     .at[:, :hid].set(w1.T)).astype(matmul_dtype)
        self.b1_p = jnp.zeros((1, hid_pad), jnp.float32).at[0, :hid].set(b1)
        self.w2_p = (jnp.zeros((hid_pad, out_dim), jnp.float32)
                     .at[:hid, :].set(w2.T)).astype(matmul_dtype)
        self.b2_p = b2.reshape(1, out_dim).astype(jnp.float32)

    def forward(self, x):
        return disnet_forward(x, self.w1_p, self.b1_p, self.w2_p, self.b2_p,
                              negative_slope=self.negative_slope)


def _reference(model, x):
    h = x @ model.w1.T + model.b1
    h = jnp.where(h > 0, h, model.negative_slope * h)
    y = h @ model.w2.T + model.b2
    return 1.0 / (1.0 + jnp.exp(-y))


if __name__ == "__main__":
    key = jax.random.PRNGKey(0)
    k_param, k_x = jax.random.split(key)

    batch, in_dim, out_dim = 8, 32, 32
    x = jax.random.normal(k_x, (batch, in_dim), dtype=jnp.float32)

    # --- default bf16-MXU path (the perf-relevant config); tolerance gated on
    #     dtype per the review.
    model_bf16 = DisNet(k_param, in_dim, out_dim)          # matmul_dtype=bf16
    out = jax.block_until_ready(model_bf16.forward(x))
    assert out.shape == (batch, out_dim)
    ref = _reference(model_bf16, x)
    assert np.allclose(np.asarray(out), np.asarray(ref), atol=2e-2, rtol=2e-2)
    assert np.all(np.asarray(out) >= 0.0) and np.all(np.asarray(out) <= 1.0)

    # --- f32 exact path, tight tolerance.
    model_f32 = DisNet(k_param, in_dim, out_dim, matmul_dtype=jnp.float32)
    out32 = jax.block_until_ready(model_f32.forward(x))
    ref32 = _reference(model_f32, x)
    assert np.allclose(np.asarray(out32), np.asarray(ref32),
                       atol=1e-5, rtol=1e-5)

    # --- multi-block grid + balanced ragged tail (m=40 -> two blocks of 24/16).
    x_big = jax.random.normal(k_x, (40, in_dim), dtype=jnp.float32)
    out_big = jax.block_until_ready(model_f32.forward(x_big))
    assert out_big.shape == (40, out_dim)
    ref_big = _reference(model_f32, x_big)
    assert np.allclose(np.asarray(out_big), np.asarray(ref_big),
                       atol=1e-5, rtol=1e-5)

    print("KERNEL_OK")
</pallas_src>

<mosaic_0001>
module attributes {stable_mosaic.version = 11 : i64} {
  func.func @_disnet_kernel(%arg0: i32, %arg1: memref<8x32xf32, #tpu.memory_space<vmem>>, %arg2: memref<32x128xbf16, #tpu.memory_space<vmem>>, %arg3: memref<1x128xf32, #tpu.memory_space<vmem>>, %arg4: memref<128x32xbf16, #tpu.memory_space<vmem>>, %arg5: memref<1x32xf32, #tpu.memory_space<vmem>>, %arg6: memref<8x32xf32, #tpu.memory_space<vmem>>) attributes {dimension_semantics = [#tpu.dimension_semantics<parallel>], iteration_bounds = array<i64: 1>, scalar_prefetch = 0 : i64, scratch_operands = 0 : i64, tpu.core_type = #tpu.core_type<tc>, window_params = [{transform_indices = @transform_0, window_bounds = array<i64: 8, 32>}, {pipeline_mode = #tpu.pipeline_mode<synchronous>, transform_indices = @transform_1, window_bounds = array<i64: 32, 128>}, {pipeline_mode = #tpu.pipeline_mode<synchronous>, transform_indices = @transform_2, window_bounds = array<i64: 1, 128>}, {pipeline_mode = #tpu.pipeline_mode<synchronous>, transform_indices = @transform_3, window_bounds = array<i64: 128, 32>}, {pipeline_mode = #tpu.pipeline_mode<synchronous>, transform_indices = @transform_4, window_bounds = array<i64: 1, 32>}, {transform_indices = @transform_5, window_bounds = array<i64: 8, 32>}]} {
    %c0 = arith.constant 0 : index
    %c0_0 = arith.constant 0 : index
    %0 = vector.load %arg1[%c0, %c0_0] : memref<8x32xf32, #tpu.memory_space<vmem>>, vector<8x32xf32>
    %1 = arith.truncf %0 : vector<8x32xf32> to vector<8x32xbf16>
    %c0_1 = arith.constant 0 : index
    %c0_2 = arith.constant 0 : index
    %2 = vector.load %arg2[%c0_1, %c0_2] : memref<32x128xbf16, #tpu.memory_space<vmem>>, vector<32x128xbf16>
    %cst = arith.constant dense<0.000000e+00> : vector<8x128xf32>
    %3 = tpu.matmul %1, %2, %cst {dimension_numbers = #tpu.dot_dimension_numbers<[1], [0], [0], [1], [0, 0, 1, 1], [], []>} : vector<8x32xbf16>, vector<32x128xbf16>, vector<8x128xf32> -> vector<8x128xf32>
    %c0_3 = arith.constant 0 : index
    %c0_4 = arith.constant 0 : index
    %4 = vector.load %arg3[%c0_3, %c0_4] : memref<1x128xf32, #tpu.memory_space<vmem>>, vector<1x128xf32>
    %5 = vector.broadcast %4 : vector<1x128xf32> to vector<8x128xf32>
    %6 = arith.addf %3, %5 : vector<8x128xf32>
    %cst_5 = arith.constant 0.000000e+00 : f32
    %7 = vector.broadcast %cst_5 : f32 to vector<8x128xf32>
    %8 = arith.cmpf ogt, %6, %7 : vector<8x128xf32>
    %cst_6 = arith.constant 2.000000e-01 : f32
    %9 = vector.broadcast %cst_6 : f32 to vector<8x128xf32>
    %10 = arith.mulf %9, %6 : vector<8x128xf32>
    %11 = arith.select %8, %6, %10 : vector<8x128xi1>, vector<8x128xf32>
    %12 = arith.truncf %11 : vector<8x128xf32> to vector<8x128xbf16>
    %c0_7 = arith.constant 0 : index
    %c0_8 = arith.constant 0 : index
    %13 = vector.load %arg4[%c0_7, %c0_8] : memref<128x32xbf16, #tpu.memory_space<vmem>>, vector<128x32xbf16>
    %cst_9 = arith.constant dense<0.000000e+00> : vector<8x32xf32>
    %14 = tpu.matmul %12, %13, %cst_9 {dimension_numbers = #tpu.dot_dimension_numbers<[1], [0], [0], [1], [0, 0, 1, 1], [], []>} : vector<8x128xbf16>, vector<128x32xbf16>, vector<8x32xf32> -> vector<8x32xf32>
    %c0_10 = arith.constant 0 : index
    %c0_11 = arith.constant 0 : index
    %15 = vector.load %arg5[%c0_10, %c0_11] : memref<1x32xf32, #tpu.memory_space<vmem>>, vector<1x32xf32>
    %16 = vector.broadcast %15 : vector<1x32xf32> to vector<8x32xf32>
    %17 = arith.addf %14, %16 : vector<8x32xf32>
    %cst_12 = arith.constant 0.000000e+00 : f32
    %18 = vector.broadcast %cst_12 : f32 to vector<8x32xf32>
    %19 = arith.subf %18, %17 : vector<8x32xf32>
    %20 = math.exp %19 : vector<8x32xf32>
    %cst_13 = arith.constant 1.000000e+00 : f32
    %21 = vector.broadcast %cst_13 : f32 to vector<8x32xf32>
    %22 = arith.addf %21, %20 : vector<8x32xf32>
    %cst_14 = arith.constant 1.000000e+00 : f32
    %23 = vector.broadcast %cst_14 : f32 to vector<8x32xf32>
    %24 = arith.divf %23, %22 : vector<8x32xf32>
    %c0_15 = arith.constant 0 : index
    %c0_16 = arith.constant 0 : index
    %25 = vector.load %arg6[%c0_15, %c0_16] : memref<8x32xf32, #tpu.memory_space<vmem>>, vector<8x32xf32>
    tpu.vector_store %arg6[%c0_15, %c0_16], %24 {strides = array<i32>} : memref<8x32xf32, #tpu.memory_space<vmem>>, vector<8x32xf32>,
    return
  }
  func.func @transform_0(%arg0: i32) -> (i32, i32) {
    %c0_i32 = arith.constant 0 : i32
    %c0_i32_0 = arith.constant 0 : i32
    return %arg0, %c0_i32 : i32, i32
  }
  func.func @transform_1(%arg0: i32) -> (i32, i32) {
    %c0_i32 = arith.constant 0 : i32
    %c0_i32_0 = arith.constant 0 : i32
    %c0_i32_1 = arith.constant 0 : i32
    return %c0_i32, %c0_i32_0 : i32, i32
  }
  func.func @transform_2(%arg0: i32) -> (i32, i32) {
    %c0_i32 = arith.constant 0 : i32
    %c0_i32_0 = arith.constant 0 : i32
    %c0_i32_1 = arith.constant 0 : i32
    return %c0_i32, %c0_i32_0 : i32, i32
  }
  func.func @transform_3(%arg0: i32) -> (i32, i32) {
    %c0_i32 = arith.constant 0 : i32
    %c0_i32_0 = arith.constant 0 : i32
    %c0_i32_1 = arith.constant 0 : i32
    return %c0_i32, %c0_i32_0 : i32, i32
  }
  func.func @transform_4(%arg0: i32) -> (i32, i32) {
    %c0_i32 = arith.constant 0 : i32
    %c0_i32_0 = arith.constant 0 : i32
    %c0_i32_1 = arith.constant 0 : i32
    return %c0_i32, %c0_i32_0 : i32, i32
  }
  func.func @transform_5(%arg0: i32) -> (i32, i32) {
    %c0_i32 = arith.constant 0 : i32
    %c0_i32_0 = arith.constant 0 : i32
    return %arg0, %c0_i32 : i32, i32
  }
}

</mosaic_0001>

<bundles_post_ra>
// kernel: tpu_custom_call.1
= control target key start
LH: loop header
LB: loop body
LE: loop exit
PB: predicated region body
PF: predicated region fallthrough
CT: control target
= control target key end

     0   :  { %v319_v1 = vmov 0.0   ;;  %vm320_vm0 = vmmov 0   ;;  %vm47_vm1 = vcmask 261120   ;;  %s396_s0 = inlined_call_operand.vmem [shape: f32[8,32], index: 0, kind: input, shape index: {}]   ;;  %s397_s1 = inlined_call_operand.vmem [shape: bf16[32,128], index: 1, kind: input, shape index: {}]   ;;  %s398_s2 = inlined_call_operand.vmem [shape: f32[1,128], index: 2, kind: input, shape index: {}]   ;;  %s399_s3 = inlined_call_operand.vmem [shape: bf16[128,32], index: 3, kind: input, shape index: {}]   ;;  %s400_s4 = inlined_call_operand.vmem [shape: f32[1,32], index: 4, kind: input, shape index: {}]   ;;  %s401_s5 = inlined_call_operand.hbm [shape: f32[8,32], index: 5, kind: output, shape index: {}]  }
   0x1   :  { %v283_v0 = vld [vmem:[%s397_s1 + $0x8] sm:$0xff]   ;;  %252 = vmatprep.subr.bf16.mxu0 %v319_v1  ;;  %v284_v2 = vld [vmem:[%s397_s1] sm:$0xff]   ;;  %260 = vmatprep.subr.bf16.mxu1 %v319_v1  ;;  %v285_v4 = vld [vmem:[%s399_s3 + $0x38] sm:$0xff]  }
   0x2   :  { %253 = vmatpush3.bf16.msra.mxu0 %v283_v0  ;;  %256 = vmatprep.mubr.msk.bf16.mxu0 %vm320_vm0, %v319_v1  ;;  %v22_v3 = vld [vmem:[%s396_s0] sm:$0xff]  ;;  %v286_v6 = vld [vmem:[%s399_s3 + $0x30] sm:$0xff]   ;;  %v287_v7 = vld [vmem:[%s399_s3 + $0x28] sm:$0xff]  }
   0x3   :  { %254 = vmatprep.subr.bf16.mxu0 %v319_v1  ;;  %276 = vmatprep.mubr.msk.bf16.mxu1 %vm320_vm0, %v319_v1  ;;  %v23_v5 = vpack.c.bf16 %v22_v3, %v22_v3 }
   0x4   :  { %261 = vmatpush3.bf16.msra.mxu1 %v285_v4 }
   0x5   :  { %262 = vmatprep.subr.bf16.mxu1 %v319_v1 }
   0x6   :  { %255 = vmatpush3.bf16.msra.mxu0 %v284_v2 }
   0x8   :  { %263 = vmatpush3.bf16.msra.mxu1 %v286_v6 }
   0x9   :  { %257 = vmatmul.mubr.msk.bf16.vlgmr.msra.gmra.mxu0 %vm47_vm1, %v23_v5  ;;  %264 = vmatprep.subr.bf16.mxu1 %v319_v1 }
   0xa   :  { %10 = vsyncpa [#allocation3], 0  ;;  %v288_v8 = vld [vmem:[%s399_s3 + $0x20] sm:$0xff]   ;;  %v289_v9 = vld [vmem:[%s399_s3 + $0x18] sm:$0xff]  }
   0xb   :  { %v290_v10 = vld [vmem:[%s399_s3 + $0x10] sm:$0xff]   ;;  %v291_v11 = vld [vmem:[%s399_s3 + $0x8] sm:$0xff]   ;;  %v292_v12 = vld [vmem:[%s399_s3] sm:$0xff]  }
   0xc   :  { %265 = vmatpush3.bf16.msra.mxu1 %v287_v7  ;;  %v227_v13 = vld [vmem:[%s398_s2] ss:$0 sm:$0xff]  ;;  %s321_s2 = smov [#allocation2]  }
   0xd   :  { %266 = vmatprep.subr.bf16.mxu1 %v319_v1  ;;  %v231_v22 = vld [vmem:[%s400_s4] ss:$0 sm:$0xff]  ;;  %s219_s3 = sshll.u32 %s321_s2, 4  ;;  %s220_s3 = int_to_ptr.vmem [resolvable:$true] %s219_s3 }
   0xe   :  { %s297_s17 = scalar_lea.vmem %s220_s3, 128  ;;  %p302_p1 = scmp.lt.s32.totalorder %s220_s3, %s220_s3 }
   0xf   :  { %p298_p0 = scmp.ne.s32.totalorder %s220_s3, %s297_s17  ;;  %p303_p2 = scmp.lt.s32.totalorder %s297_s17, %s297_s17 }
  0x10   :  { %267 = vmatpush3.bf16.msra.mxu1 %v288_v8 }
  0x11   :  { %268 = vmatprep.subr.bf16.mxu1 %v319_v1  ;;  %p304_p3 = por %p303_p2, %p302_p1 }
  0x13   :  { %p305_p4 = pnand %p304_p3, %p298_p0 }
  0x14   :  { %269 = vmatpush3.bf16.msra.mxu1 %v289_v9 }
  0x15   :  { %270 = vmatprep.subr.bf16.mxu1 %v319_v1 }
  0x18   :  { %271 = vmatpush3.bf16.msra.mxu1 %v290_v10 }
  0x19   :  { %272 = vmatprep.subr.bf16.mxu1 %v319_v1 }
  0x1c   :  { %273 = vmatpush3.bf16.msra.mxu1 %v291_v11 }
  0x1d   :  { %274 = vmatprep.subr.bf16.mxu1 %v319_v1 }
  0x20   :  { %275 = vmatpush3.bf16.msra.mxu1 %v292_v12 }
  0xc9   :  { %v85_v14 = vpop.f32.mrf.mxu0 }
  0xca   :  { %v86_v15 = vadd.f32 %v227_v13, %v85_v14 }
  0xcb   :  { %v258_v16 = vpop.f32.mrf.mxu0 }
  0xcc   :  { %vm91_vm2 = vcmp.gt.f32.partialorder %v86_v15, 0.0  ;;  %v92_v17 = vmul.f32 0.2, %v86_v15 }
  0xcd   :  { %v88_v18 = vpop.f32.mrf.mxu0 }
  0xce   :  { %v93_v19 = vsel %vm91_vm2, %v86_v15, %v92_v17 }
  0xcf   :  { %v259_v20 = vpop.f32.mrf.mxu0  ;;  %v94_v21 = vpack.c.bf16 %v93_v19, %v93_v19 }
  0xd1   :  { %277 = vmatmul.mubr.bf16.vlgmr.msra.gmra.mxu1 %v94_v21 }
 0x191   :  { %v200_v23 = vpop.f32.mrf.mxu1 }
 0x192   :  { %v201_v24 = vadd.f32 %v231_v22, %v200_v23 }
 0x193   :  { %v278_v25 = vpop.f32.mrf.mxu1 }
 0x194   :  { %v206_v26 = vsub.f32 0.0, %v201_v24 }
 0x195   :  { %v203_v27 = vpop.f32.mrf.mxu1 }
 0x196   :  { %v207_v28 = vmul.f32 1.442695, %v206_v26 }
 0x197   :  { %v279_v29 = vpop.f32.mrf.mxu1 }
 0x198   :  { %293 = vpow2.f32 %v207_v28 }
 0x1a5   :  { %v294_v30 = vpop.eup %293 }
 0x1a6   :  { %v209_v31 = vadd.f32 1.0, %v294_v30 }
 0x1a8   :  { %295 = vrcp.f32 %v209_v31 }
 0x1b5   :  { %v296_v32 = vpop.eup %295 }
 0x1b6   :  { %212 = vst.msk [vmem:[#allocation2] sm:$0xff] %vm47_vm1, %v296_v32 }
 0x1b7   :  { %308 = shalt.err (!%p305_p4)
}
 0x1b8   :  { %222 = dma.vmem_to_hbm [thread:$0]  %s220_s3, 128, %s401_s5, [#allocation3]  }
 0x1b9   :  { %317 = dma.done.wait [#allocation3], 128  }
 0x1ba   :  { %318 = vsyncadd [#allocation3], 4294967168 }
 0x1bb   :  { %226 = vsyncpa [#allocation3], 1 }

</bundles_post_ra>
